<compile_context>
chip_gen: v6e
topology: v6e:2x2x1
jax: 0.10.0
libtpu: 0.0.40
codegen_flags: <defaults>
</compile_context>

<pallas_src>
import functools

import jax
import jax.numpy as jnp
from jax.experimental import pallas as pl
from jax.experimental.pallas import tpu as pltpu


def _weighted_ce_kernel(logits_ref, targets_ref, weights_ref, out_ref, *, hw, tl):
    """One (batch, spatial-tile) step: per-lane weighted-CE partial sums."""
    s = pl.program_id(1)

    @pl.when(s == 0)
    def _():
        out_ref[...] = jnp.zeros_like(out_ref)

    x = logits_ref[0].astype(jnp.float32)          # (C, TL)  class x spatial
    t = targets_ref[0]                             # (1, TL)  int32
    w = weights_ref[...]                           # (C, 1)   f32 class weights
    c = x.shape[0]

    # Numerically-stable log-sum-exp over the class (sublane) axis.
    m = jnp.max(x, axis=0, keepdims=True)                                  # (1, TL)
    lse = m + jnp.log(jnp.sum(jnp.exp(x - m), axis=0, keepdims=True))      # (1, TL)

    # Gather target logit and target class-weight via one-hot select
    # (no dynamic gather on TPU).
    cls = jax.lax.broadcasted_iota(jnp.int32, (c, tl), 0)                  # (C, TL)
    onehot = cls == t                                                      # (C, TL)
    x_t = jnp.sum(jnp.where(onehot, x, 0.0), axis=0, keepdims=True)        # (1, TL)
    w_t = jnp.sum(jnp.where(onehot, w, 0.0), axis=0, keepdims=True)        # (1, TL)

    loss_vec = w_t * (lse - x_t)                   # = -w[t] * log_softmax[t]

    # Mask the ragged spatial tail with a select (select also kills NaN/inf
    # coming from garbage in the padded boundary block).
    pos = s * tl + jax.lax.broadcasted_iota(jnp.int32, (1, tl), 1)
    valid = pos < hw
    loss_vec = jnp.where(valid, loss_vec, 0.0)
    w_t = jnp.where(valid, w_t, 0.0)

    # Row 0: weighted-loss partials, row 1: weight partials (per lane).
    out_ref[...] += jnp.concatenate([loss_vec, w_t], axis=0)[None]


def _choose_spatial_tile(hw, c, itemsize, budget_bytes=2 << 20):
    """Largest lane-tile (multiple of 128) whose logits slab fits the budget."""
    max_tl = max(128, ((budget_bytes // max(1, c * itemsize)) // 128) * 128)
    return int(min(max_tl, pl.cdiv(hw, 128) * 128))


def weighted_cross_entropy(logits, targets, class_weights):
    """logits: (N, C, H, W); targets: (N, H, W) int; class_weights: (C,). Scalar f32."""
    n, c, h, w = logits.shape
    hw = h * w
    logits3 = logits.reshape(n, c, hw)                       # contiguous merge, no transpose
    targets3 = targets.reshape(n, 1, hw).astype(jnp.int32)   # lane-dense targets
    weights2 = class_weights.reshape(c, 1).astype(jnp.float32)

    tl = _choose_spatial_tile(hw, c, jnp.dtype(logits.dtype).itemsize)
    gs = pl.cdiv(hw, tl)

    kernel = functools.partial(_weighted_ce_kernel, hw=hw, tl=tl)
    partials = pl.pallas_call(
        kernel,
        out_shape=jax.ShapeDtypeStruct((n, 2, tl), jnp.float32),
        grid_spec=pltpu.PrefetchScalarGridSpec(
            num_scalar_prefetch=0,
            grid=(n, gs),
            in_specs=[
                pl.BlockSpec((1, c, tl), lambda i, s: (i, 0, s)),   # logits tile (C x TL)
                pl.BlockSpec((1, 1, tl), lambda i, s: (i, 0, s)),   # targets tile (lane-dense)
                pl.BlockSpec((c, 1), lambda i, s: (0, 0)),          # class weights (resident)
            ],
            out_specs=pl.BlockSpec((1, 2, tl), lambda i, s: (i, 0, 0)),  # per-batch partials
        ),
        compiler_params=pltpu.CompilerParams(
            dimension_semantics=("parallel", "arbitrary")),
    )(logits3, targets3, weights2)

    loss_sum = jnp.sum(partials[:, 0, :])
    weight_sum = jnp.sum(partials[:, 1, :])
    return loss_sum / weight_sum


def balanced_class_weights(all_data, num_classes):
    """sklearn compute_class_weight('balanced', classes=unique(all_data), y=all_data),
    assuming every class 0..num_classes-1 occurs in all_data."""
    # TODO(synk): data-dependent np.unique has no Pallas equivalent; computed wrapper-side.
    counts = jnp.bincount(all_data.astype(jnp.int32), length=num_classes)
    n_samples = all_data.shape[0]
    return n_samples / (num_classes * counts.astype(jnp.float32))


def _weighted_ce_ref(logits, targets, class_weights):
    """Pure-JAX reference mirroring torch.nn.CrossEntropyLoss(weight=w)."""
    logp = jax.nn.log_softmax(logits.astype(jnp.float32), axis=1)           # (N,C,H,W)
    lt = jnp.take_along_axis(logp, targets[:, None].astype(jnp.int32), axis=1)[:, 0]
    wt = class_weights[targets]
    return jnp.sum(-wt * lt) / jnp.sum(wt)


if __name__ == "__main__":
    key = jax.random.PRNGKey(0)
    k1, k2, k3 = jax.random.split(key, 3)
    N, C, H, W = 2, 4, 16, 16
    logits = jax.random.normal(k1, (N, C, H, W), dtype=jnp.float32)
    targets = jax.random.randint(k2, (N, H, W), minval=0, maxval=C, dtype=jnp.int32)

    # "all_data" that the module uses to derive balanced class weights; include
    # every class at least once so the 'balanced' formula is well defined.
    all_data = jnp.concatenate(
        [jnp.arange(C, dtype=jnp.int32),
         jax.random.randint(k3, (1024,), minval=0, maxval=C, dtype=jnp.int32)])
    weights = balanced_class_weights(all_data, C)

    out = jax.block_until_ready(weighted_cross_entropy(logits, targets, weights))
    ref = jax.block_until_ready(_weighted_ce_ref(logits, targets, weights))
    assert jnp.allclose(out, ref, rtol=1e-4, atol=1e-5), (out, ref)

    print("KERNEL_OK")
</pallas_src>

<mosaic_0001>
module attributes {stable_mosaic.version = 11 : i64} {
  func.func @_weighted_ce_kernel(%arg0: i32, %arg1: i32, %arg2: memref<1x4x256xf32, #tpu.memory_space<vmem>>, %arg3: memref<1x1x256xi32, #tpu.memory_space<vmem>>, %arg4: memref<4x1xf32, #tpu.memory_space<vmem>>, %arg5: memref<1x2x256xf32, #tpu.memory_space<vmem>>) attributes {dimension_semantics = [#tpu.dimension_semantics<parallel>, #tpu.dimension_semantics<arbitrary>], iteration_bounds = array<i64: 2, 1>, scalar_prefetch = 0 : i64, scratch_operands = 0 : i64, tpu.core_type = #tpu.core_type<tc>, window_params = [{transform_indices = @transform_0, window_bounds = array<i64: 1, 4, 256>}, {transform_indices = @transform_1, window_bounds = array<i64: 1, 1, 256>}, {pipeline_mode = #tpu.pipeline_mode<synchronous>, transform_indices = @transform_2, window_bounds = array<i64: 4, 1>}, {transform_indices = @transform_3, window_bounds = array<i64: 1, 2, 256>}]} {
    %c0_i32 = arith.constant 0 : i32
    %0 = arith.cmpi eq, %arg1, %c0_i32 : i32
    %1 = arith.extui %0 : i1 to i32
    %c0_i32_0 = arith.constant 0 : i32
    %2 = arith.cmpi ne, %1, %c0_i32_0 : i32
    scf.if %2 {
      %cst_22 = arith.constant 0.000000e+00 : f32
      %47 = vector.broadcast %cst_22 : f32 to vector<1x2x256xf32>
      %c0_23 = arith.constant 0 : index
      %c0_24 = arith.constant 0 : index
      %c0_25 = arith.constant 0 : index
      %48 = vector.load %arg5[%c0_23, %c0_24, %c0_25] : memref<1x2x256xf32, #tpu.memory_space<vmem>>, vector<1x2x256xf32>
      tpu.vector_store %arg5[%c0_23, %c0_24, %c0_25], %47 {strides = array<i32>} : memref<1x2x256xf32, #tpu.memory_space<vmem>>, vector<1x2x256xf32>,
    } else {
    }
    %c0 = arith.constant 0 : index
    %c0_1 = arith.constant 0 : index
    %c0_2 = arith.constant 0 : index
    %3 = vector.load %arg2[%c0, %c0_1, %c0_2] : memref<1x4x256xf32, #tpu.memory_space<vmem>>, vector<1x4x256xf32>
    %4 = vector.shape_cast %3 : vector<1x4x256xf32> to vector<4x256xf32>
    %c0_3 = arith.constant 0 : index
    %c0_4 = arith.constant 0 : index
    %c0_5 = arith.constant 0 : index
    %5 = vector.load %arg3[%c0_3, %c0_4, %c0_5] : memref<1x1x256xi32, #tpu.memory_space<vmem>>, vector<1x1x256xi32>
    %6 = vector.shape_cast %5 : vector<1x1x256xi32> to vector<1x256xi32>
    %c0_6 = arith.constant 0 : index
    %c0_7 = arith.constant 0 : index
    %7 = vector.load %arg4[%c0_6, %c0_7] : memref<4x1xf32, #tpu.memory_space<vmem>>, vector<4x1xf32>
    %cst = arith.constant dense<0xFF800000> : vector<256xf32>
    %8 = vector.multi_reduction <maximumf>, %4, %cst [0] : vector<4x256xf32> to vector<256xf32>
    %9 = vector.shape_cast %8 : vector<256xf32> to vector<1x256xf32>
    %10 = vector.broadcast %9 : vector<1x256xf32> to vector<4x256xf32>
    %11 = arith.subf %4, %10 : vector<4x256xf32>
    %12 = math.exp %11 : vector<4x256xf32>
    %cst_8 = arith.constant dense<0.000000e+00> : vector<256xf32>
    %13 = vector.multi_reduction <add>, %12, %cst_8 [0] : vector<4x256xf32> to vector<256xf32>
    %14 = vector.shape_cast %13 : vector<256xf32> to vector<1x256xf32>
    %15 = math.log %14 : vector<1x256xf32>
    %16 = arith.addf %9, %15 : vector<1x256xf32>
    %17 = tpu.iota {dimensions = array<i32: 0>} : vector<4x256xi32>
    %18 = vector.broadcast %6 : vector<1x256xi32> to vector<4x256xi32>
    %19 = arith.cmpi eq, %17, %18 : vector<4x256xi32>
    %cst_9 = arith.constant 0.000000e+00 : f32
    %20 = vector.broadcast %cst_9 : f32 to vector<4x256xf32>
    %21 = arith.select %19, %4, %20 : vector<4x256xi1>, vector<4x256xf32>
    %cst_10 = arith.constant dense<0.000000e+00> : vector<256xf32>
    %22 = vector.multi_reduction <add>, %21, %cst_10 [0] : vector<4x256xf32> to vector<256xf32>
    %23 = vector.shape_cast %22 : vector<256xf32> to vector<1x256xf32>
    %cst_11 = arith.constant 0.000000e+00 : f32
    %24 = vector.shape_cast %7 : vector<4x1xf32> to vector<4x1xf32>
    %25 = vector.broadcast %24 : vector<4x1xf32> to vector<4x256xf32>
    %26 = vector.broadcast %cst_11 : f32 to vector<4x256xf32>
    %27 = arith.select %19, %25, %26 : vector<4x256xi1>, vector<4x256xf32>
    %cst_12 = arith.constant dense<0.000000e+00> : vector<256xf32>
    %28 = vector.multi_reduction <add>, %27, %cst_12 [0] : vector<4x256xf32> to vector<256xf32>
    %29 = vector.shape_cast %28 : vector<256xf32> to vector<1x256xf32>
    %30 = arith.subf %16, %23 : vector<1x256xf32>
    %31 = arith.mulf %29, %30 : vector<1x256xf32>
    %c256_i32 = arith.constant 256 : i32
    %32 = arith.muli %arg1, %c256_i32 : i32
    %33 = tpu.iota {dimensions = array<i32: 1>} : vector<1x256xi32>
    %34 = vector.broadcast %32 : i32 to vector<1x256xi32>
    %35 = arith.addi %34, %33 : vector<1x256xi32>
    %c256_i32_13 = arith.constant 256 : i32
    %36 = vector.broadcast %c256_i32_13 : i32 to vector<1x256xi32>
    %37 = arith.cmpi slt, %35, %36 : vector<1x256xi32>
    %cst_14 = arith.constant 0.000000e+00 : f32
    %38 = vector.broadcast %cst_14 : f32 to vector<1x256xf32>
    %39 = arith.select %37, %31, %38 : vector<1x256xi1>, vector<1x256xf32>
    %cst_15 = arith.constant 0.000000e+00 : f32
    %40 = vector.broadcast %cst_15 : f32 to vector<1x256xf32>
    %41 = arith.select %37, %29, %40 : vector<1x256xi1>, vector<1x256xf32>
    %c0_16 = arith.constant 0 : index
    %c0_17 = arith.constant 0 : index
    %c0_18 = arith.constant 0 : index
    %42 = vector.load %arg5[%c0_16, %c0_17, %c0_18] : memref<1x2x256xf32, #tpu.memory_space<vmem>>, vector<1x2x256xf32>
    %43 = tpu.concatenate %39, %41 in 0 : vector<1x256xf32>, vector<1x256xf32> -> vector<2x256xf32>
    %44 = vector.shape_cast %43 : vector<2x256xf32> to vector<1x2x256xf32>
    %45 = arith.addf %42, %44 : vector<1x2x256xf32>
    %c0_19 = arith.constant 0 : index
    %c0_20 = arith.constant 0 : index
    %c0_21 = arith.constant 0 : index
    %46 = vector.load %arg5[%c0_19, %c0_20, %c0_21] : memref<1x2x256xf32, #tpu.memory_space<vmem>>, vector<1x2x256xf32>
    tpu.vector_store %arg5[%c0_19, %c0_20, %c0_21], %45 {strides = array<i32>} : memref<1x2x256xf32, #tpu.memory_space<vmem>>, vector<1x2x256xf32>,
    return
  }
  func.func @transform_0(%arg0: i32, %arg1: i32) -> (i32, i32, i32) {
    %c0_i32 = arith.constant 0 : i32
    %c0_i32_0 = arith.constant 0 : i32
    return %arg0, %c0_i32, %arg1 : i32, i32, i32
  }
  func.func @transform_1(%arg0: i32, %arg1: i32) -> (i32, i32, i32) {
    %c0_i32 = arith.constant 0 : i32
    %c0_i32_0 = arith.constant 0 : i32
    return %arg0, %c0_i32, %arg1 : i32, i32, i32
  }
  func.func @transform_2(%arg0: i32, %arg1: i32) -> (i32, i32) {
    %c0_i32 = arith.constant 0 : i32
    %c0_i32_0 = arith.constant 0 : i32
    %c0_i32_1 = arith.constant 0 : i32
    return %c0_i32, %c0_i32_0 : i32, i32
  }
  func.func @transform_3(%arg0: i32, %arg1: i32) -> (i32, i32, i32) {
    %c0_i32 = arith.constant 0 : i32
    %c0_i32_0 = arith.constant 0 : i32
    %c0_i32_1 = arith.constant 0 : i32
    return %arg0, %c0_i32, %c0_i32_0 : i32, i32, i32
  }
}

</mosaic_0001>

<bundles_post_ra>
// kernel: tpu_custom_call.1
= control target key start
LH: loop header
LB: loop body
LE: loop exit
PB: predicated region body
PF: predicated region fallthrough
CT: control target
= control target key end

     0   :  { %8 = vsyncpa [#allocation3], 0  ;;  %s893_s0 = inlined_call_operand.hbm [shape: f32[2,4,256], index: 0, kind: input, shape index: {}]   ;;  %s894_s1 = inlined_call_operand.vmem [shape: s32[2,1,256], index: 1, kind: input, shape index: {}]   ;;  %s895_s2 = inlined_call_operand.vmem [shape: f32[4,1], index: 2, kind: input, shape index: {}]   ;;  %s896_s3 = inlined_call_operand.hbm [shape: f32[2,2,256], index: 3, kind: output, shape index: {}]  }
   0x1   :  { %10 = vsyncpa [#allocation3 + $0x1], 0 }
   0x2   :  { %11 = vsyncpa [#allocation4], 0 }
   0x3   :  { %13 = vsyncpa [#allocation4 + $0x1], 0  ;;  %s713_s12 = smov 0   ;;  %s715_s13 = smov 0  }
   0x4   :  { %s717_s14 = smov 0   ;;  %s719_s15 = smov 0  }
   0x5   :  { %s721_s16 = smov 0   ;;  %s723_s17 = smov 0  }
   0x6 LB: > { %s487_s18 = sadd.s32 4294967295, %s686_s17   ;;  %s488_s19 = sadd.s32 4294967294, %s686_s17   ;;  %s686_s17 = sphi %s723_s17, %s19_s17   ;;  %s682_s16 = sphi %s721_s16, %s908_s16   ;;  %s678_s15 = sphi %s719_s15, %s907_s15   ;;  %s674_s14 = sphi %s717_s14, %s906_s14   ;;  %s670_s13 = sphi %s715_s13, %s905_s13   ;;  %s666_s12 = sphi %s713_s12, %s904_s12  }
   0x7   : > { %s31_s20 = sadd.s32 1, %s682_s16  ;;  %s40_s21 = sadd.s32 1, %s674_s14 }
   0x8   : > { %p33_p0 = scmp.ge.s32.totalorder %s31_s20, 2  ;;  %p47_p1 = scmp.ne.s32.totalorder %s674_s14, %s670_s13 }
   0x9   : > { %p48_p2 = scmp.eq.s32.totalorder %s686_s17, 0  ;;  %p53_p3 = scmp.ne.s32.totalorder %s670_s13, %s666_s12 }
   0xa   : > { %s910_s20 = smov (%p33_p0, %s31_s20), 0  ;;  %p54_p5 = scmp.eq.s32.totalorder %s487_s18, 0 }
   0xb   : > { %p754_p4 = por %p48_p2, %p47_p1  ;;  %s35_s23 = ssub.s32 %s682_s16, %s910_s20 }
   0xc   : > { %p126_p6 = scmp.eq.s32.totalorder %s487_s18, 1  ;;  %p38_p7 = scmp.eq.s32.totalorder %s35_s23, 0 }
   0xd   : > { %p760_p8 = por %p54_p5, %p53_p3  ;;  %p132_p10 = scmp.eq.s32.totalorder %s488_s19, 1 }
   0xe   : > { %p764_p9 = por %p126_p6, %p47_p1  ;;  %p517_p13 = scmp.lt.s32.totalorder %s686_s17, 2 }
   0xf   : > { %s769_s26 = scalar_select %p38_p7, %s674_s14, %s40_s21  }
  0x10   : > { %p771_p11 = por %p132_p10, %p53_p3  ;;  %s155_s28 = sand.u32 1, %s674_s14  }
  0x11   : > { %s491_s29 = sshll.u32 %s155_s28, 3  ;;  %s503_s30 = sshll.u32 %s682_s16, 7 }
  0x12   : > { %s900_s27 = scalar_select %p771_p11, 1, 0 }
  0x13   : > { %s167_s6 = scalar_lea.hbm %s893_s0, %s503_s30  ;;  %s159_s7 = scalar_lea.vmem [#allocation2], %s491_s29 }
  0x14   : > { %s169_s8 = sshll.u32 %s159_s7, 4  ;;  %p784_p0 = pnand %p517_p13, %p754_p4  ;;  %s170_s8 = int_to_ptr.vmem [resolvable:$true] %s169_s8 }
  0x15   : > { %p494_p1 = scmp.ge.s32.totalorder %s686_s17, 1  ;;  %p186_p2 = scmp.lt.s32.totalorder %s686_s17, 3 }
  0x16   : > { %s156_s10 = scalar_lea.sflag [#allocation3], %s155_s28  ;;  %p580_p3 = pneg %p784_p0 }
  0x17   : > { %s591_s11 = scalar_lea.vmem %s170_s8, 128  ;;  %s688_s18 = smov [#allocation2]  }
  0x18   : > { %p592_p5 = scmp.ne.s32.totalorder %s170_s8, %s591_s11  ;;  %s596_s19 = sshll.u32 %s688_s18, 4  ;;  %s597_s19 = int_to_ptr.vmem [resolvable:$false] %s596_s19 }
  0x19   : > { %s598_s21 = scalar_lea.vmem %s597_s19, 256  ;;  %p599_p10 = scmp.lt.s32.totalorder %s170_s8, %s597_s19 }
  0x1a   : > { %p594_p6 = pnand %p592_p5, %p580_p3  ;;  %p600_p12 = scmp.lt.s32.totalorder %s598_s21, %s591_s11 }
  0x1c   : > { %p595_p7 = pneg %p594_p6  ;;  %p601_p4 = por %p600_p12, %p599_p10 }
  0x1e   : > { %p602_p13 = pnand %p601_p4, %p595_p7 }
  0x20   : > { %605 = shalt.err (!%p602_p13)
}
  0x21   : > { %512 = dma.hbm_to_vmem [thread:$0]  (!%p784_p0), %s167_s6, 128, %s170_s8, %s156_s10  }
  0x22   : > { %p187_p11 = pnand %p494_p1, %p186_p2 }
  0x23   : > { %s799_s22 = sand.u32 (!%p187_p11), 1, %s670_s13  }
  0x24   : > { %190 = sbr.rel (%p187_p11) target bundleno = 204 (0xcc), region = 32  ;;  %s495_s23 = sshll.u32 (!%p187_p11), %s799_s22, 3 }
  0x25   : > { %s193_s28 = scalar_lea.sflag (!%p187_p11), [#allocation3], %s799_s22  ;;  %s196_s29 = scalar_lea.vmem (!%p187_p11), [#allocation2], %s495_s23 }
  0x29   : > { %657 = dma.done.wait (%p760_p8), %s193_s28, 128  }
  0x2a   : > { %659 = vsyncadd (%p760_p8), %s193_s28, 4294967168  ;;  %v689_v0 = vmov 0   ;;  %v244_v1 = vld [vmem:[%s895_s2] sm:$0xf]  ;;  %s496_s5 = sshll.u32 %s799_s22, 2  ;;  %v690_v2 = vmov 0.0   ;;  %v293_v26 = vlaneseq }
  0x2b   : > { %570 = vset.pattern.permute.xlu0 %v689_v0  ;;  %s811_s6 = scalar_lea.vmem [#allocation5], %s496_s5  ;;  %v242_v3 = vld [vmem:[%s196_s29] sm:$0xff]  ;;  %vm248_vm0 = vcmask 1043456   ;;  %p229_p8 = scmp.lt.s32.totalorder %s678_s15, 1  ;;  %vm360_vm3 = vcmask 1040384  }
  0x2c   : > { %323 = vperm.xlu0 %570, %v244_v1   ;;  %241 = vst [vmem:[%s811_s6] sm:$0xf] %v690_v2  ;;  %v246_v4 = vcombine.high %v242_v3, %v242_v3  ;;  %v249_v5 = vsel %vm248_vm0, %v242_v3, -inf  ;;  %v826_v29 = vshrl.u32 %v293_v26, 7  ;;  %s504_s11 = sshll.u32 %s678_s15, 6  ;;  %s391_s18 = sshll.u32 %s811_s6, 4  ;;  %s392_s18 = int_to_ptr.vmem [resolvable:$true] %s391_s18 }
  0x2d   : > { %v250_v7 = vrot.slane %v249_v5, 4  ;;  %s230_s24 = scalar_select %p229_p8, %s678_s15, 1 }
  0x2e   : > { %v256_v6 = vsel %vm248_vm0, %v246_v4, -inf  ;;  %v297_v32 = vsub.s32 0, %v826_v29  ;;  %v301_v33 = vsub.s32 1, %v826_v29  ;;  %s389_s23 = scalar_lea.hbm %s896_s3, %s504_s11  ;;  %s377_s28 = scalar_lea.sflag [#allocation4], %s799_s22 }
  0x2f   : > { %v257_v8 = vrot.slane %v256_v6, 4  ;;  %v251_v9 = vmax.f32 %v249_v5, %v250_v7  ;;  %s497_s7 = sshll.u32 %s230_s24, 1  ;;  %s606_s29 = scalar_lea.vmem %s392_s18, 64 }
  0x30   : > { %s235_s10 = scalar_lea.vmem %s894_s1, %s497_s7  ;;  %p607_p11 = scmp.ne.s32.totalorder %s392_s18, %s606_s29 }
  0x31   : > { %v258_v10 = vmax.f32 %v256_v6, %v257_v8  ;;  %v252_v11 = vrot.slane %v251_v9, 2  ;;  %v243_v34 = vld [vmem:[%s235_s10] sm:$0x3]  ;;  %s692_s30 = smov [#allocation5]  }
  0x32   : > { %v298_v37 = vrot.slane %v243_v34, %v297_v32  ;;  %v302_v38 = vrot.slane %v243_v34, %v301_v33  ;;  %p608_p12 = pnand %p607_p11, %p764_p9  ;;  %s610_s4 = sshll.u32 %s692_s30, 4  ;;  %s611_s4 = int_to_ptr.vmem [resolvable:$false] %s610_s4 }
  0x33   : > { %v259_v12 = vrot.slane %v258_v10, 2  ;;  %v253_v13 = vmax.f32 %v251_v9, %v252_v11  ;;  %v359_v32 = vld [vmem:[%s811_s6] sm:$0xf]  ;;  %s612_s5 = scalar_lea.vmem %s611_s4, 128  ;;  %p613_p1 = scmp.lt.s32.totalorder %s392_s18, %s611_s4 }
  0x34   : > { %vm303_vm1 = vcmp.eq.s32.totalorder %v826_v29, %v298_v37  ;;  %vm304_vm2 = vcmp.eq.s32.totalorder %v826_v29, %v302_v38  ;;  %p609_p0 = pneg %p608_p12  ;;  %p614_p2 = scmp.lt.s32.totalorder %s612_s5, %s606_s29 }
  0x35   : > { %v260_v14 = vmax.f32 %v258_v10, %v259_v12  ;;  %v254_v15 = vrot.slane %v253_v13, 1  ;;  %v305_v43 = vsel %vm303_vm1, %v242_v3, 0.0  ;;  %v306_v44 = vsel %vm304_vm2, %v246_v4, 0.0 }
  0x36   : > { %v307_v47 = vsel %vm248_vm0, %v305_v43, 0.0  ;;  %v314_v48 = vsel %vm248_vm0, %v306_v44, 0.0  ;;  %p615_p3 = por %p614_p2, %p613_p1 }
  0x37   : > { %v261_v16 = vrot.slane %v260_v14, 1  ;;  %v816_v17 = vmax.f32 %v253_v13, %v254_v15  ;;  %v308_v49 = vrot.slane %v307_v47, 4  ;;  %v315_v50 = vrot.slane %v314_v48, 4 }
  0x38   : > { %p616_p5 = pnand %p615_p3, %p609_p0 }
  0x39   : > { %v818_v18 = vmax.f32 %v260_v14, %v261_v16  ;;  %v309_v51 = vadd.f32 %v308_v49, %v307_v47  ;;  %v316_v52 = vadd.f32 %v315_v50, %v314_v48  ;;  %v691_v14 = vmov 1983009808  }
  0x3a   : > { %v367_v15 = vunpack.c.l.s4 %v691_v14 }
  0x3b   : > { %v265_v19 = vcombine.low %v816_v17, %v818_v18  ;;  %v310_v53 = vrot.slane %v309_v51, 2  ;;  %v317_v54 = vrot.slane %v316_v52, 2 }
  0x3d   : > { %v267_v20 = vsub.f32 %v242_v3, %v265_v19  ;;  %v311_v55 = vadd.f32 %v310_v53, %v309_v51  ;;  %v318_v56 = vadd.f32 %v317_v54, %v316_v52 }
  0x3f   : > { %v268_v21 = vmul.f32 1.442695, %v267_v20  ;;  %v312_v62 = vrot.slane %v311_v55, 1  ;;  %v319_v63 = vrot.slane %v318_v56, 1 }
  0x41   : > { %572 = vpow2.f32 %v268_v21  ;;  %v313_v8 = vadd.f32 %v312_v62, %v311_v55  ;;  %v320_v9 = vadd.f32 %v319_v63, %v318_v56 }
  0x4e   : > { %v573_v22 = vpop.eup %572 }
  0x4f   : > { %v271_v23 = vcombine.high %v573_v22, %v573_v22  ;;  %v273_v24 = vsel %vm248_vm0, %v573_v22, 0.0 }
  0x50   : > { %v274_v27 = vrot.slane %v273_v24, 4 }
  0x51   : > { %v280_v25 = vsel %vm248_vm0, %v271_v23, 0.0 }
  0x52   : > { %v281_v28 = vrot.slane %v280_v25, 4  ;;  %v275_v30 = vadd.f32 %v274_v27, %v273_v24  ;;  %v368_v24 = vunpack.c.0.s8 %v367_v15 }
  0x54   : > { %v282_v31 = vadd.f32 %v281_v28, %v280_v25  ;;  %v276_v35 = vrot.slane %v275_v30, 2  ;;  %v371_v27 = vsub.s32 %v368_v24, %v826_v29 }
  0x56   : > { %v283_v36 = vrot.slane %v282_v31, 2  ;;  %v277_v39 = vadd.f32 %v276_v35, %v275_v30 }
  0x58   : > { %v284_v40 = vadd.f32 %v283_v36, %v282_v31  ;;  %v278_v41 = vrot.slane %v277_v39, 1 }
  0x5a   : > { %v285_v42 = vrot.slane %v284_v40, 1  ;;  %v279_v45 = vadd.f32 %v278_v41, %v277_v39 }
  0x5c   : > { %v286_v46 = vadd.f32 %v285_v42, %v284_v40  ;;  %574 = vlog2.f32 %v279_v45 }
  0x5e   : > { %576 = vlog2.f32 %v286_v46 }
  0x69   : > { %v575_v57 = vpop.eup %574 }
  0x6a   : > { %v288_v2 = vmul.f32 0.6931472, %v575_v57 }
  0x6b   : > { %v577_v58 = vpop.eup %576 }
  0x6c   : > { %v290_v3 = vmul.f32 0.6931472, %v577_v58  ;;  %v291_v10 = vadd.f32 %v288_v2, %v816_v17 }
  0x6e   : > { %v292_v11 = vadd.f32 %v290_v3, %v818_v18  ;;  %v342_v22 = vsub.f32 %v291_v10, %v313_v8 }
  0x70   : > { %v343_v23 = vsub.f32 %v292_v11, %v320_v9 }
  0xa7   : > { %v324_v59 = vpop.permute.xlu0 %323 }
  0xa8   : > { %v326_v60 = vsel %vm303_vm1, %v324_v59, 0.0  ;;  %v327_v61 = vsel %vm304_vm2, %v324_v59, 0.0 }
  0xa9   : > { %v328_v0 = vsel %vm248_vm0, %v326_v60, 0.0  ;;  %v335_v1 = vsel %vm248_vm0, %v327_v61, 0.0 }
  0xaa   : > { %v329_v4 = vrot.slane %v328_v0, 4  ;;  %v336_v5 = vrot.slane %v335_v1, 4 }
  0xac   : > { %v330_v6 = vadd.f32 %v329_v4, %v328_v0  ;;  %v337_v7 = vadd.f32 %v336_v5, %v335_v1 }
  0xae   : > { %v331_v12 = vrot.slane %v330_v6, 2  ;;  %v338_v13 = vrot.slane %v337_v7, 2 }
  0xb0   : > { %v332_v16 = vadd.f32 %v331_v12, %v330_v6  ;;  %v339_v19 = vadd.f32 %v338_v13, %v337_v7 }
  0xb2   : > { %v333_v20 = vrot.slane %v332_v16, 1  ;;  %v340_v21 = vrot.slane %v339_v19, 1 }
  0xb4   : > { %v334_v25 = vadd.f32 %v333_v20, %v332_v16  ;;  %v341_v26 = vadd.f32 %v340_v21, %v339_v19 }
  0xb6   : > { %v344_v17 = vmul.f32 %v342_v22, %v334_v25  ;;  %v345_v18 = vmul.f32 %v343_v23, %v341_v26 }
  0xb8   : > { %v361_v28 = vsel %vm360_vm3, %v344_v17, %v334_v25  ;;  %v362_v30 = vsel %vm360_vm3, %v345_v18, %v341_v26 }
  0xb9   : > { %v365_v31 = vcombine.low %v361_v28, %v362_v30 }
  0xbb   : > { %v372_v33 = vrot.slane %v365_v31, %v371_v27 }
  0xbd   : > { %v374_v34 = vadd.f32 %v372_v33, %v359_v32 }
  0xbf   : > { %375 = vst [vmem:[%s811_s6] sm:$0xf] %v374_v34 }
  0xc0   : > { %619 = shalt.err (!%p616_p5)
}
  0xc1   : > { %s620_s15 = scalar_lea.hbm %s389_s23, 64  ;;  %s624_s24 = scalar_lea.hbm %s896_s3, 128 }
  0xc2   : > { %p621_p6 = scmp.ne.s32.totalorder %s389_s23, %s620_s15  ;;  %p625_p4 = scmp.lt.s32.totalorder %s389_s23, %s896_s3 }
  0xc3   : > { %p626_p13 = scmp.lt.s32.totalorder %s624_s24, %s620_s15 }
  0xc4   : > { %p622_p7 = pnand %p621_p6, %p764_p9 }
  0xc5   : > { %p627_p8 = por %p626_p13, %p625_p4 }
  0xc6   : > { %p623_p10 = pneg %p622_p7 }
  0xc8   : > { %p628_p11 = pnand %p627_p8, %p623_p10 }
  0xca   : > { %631 = shalt.err (!%p628_p11)
}
  0xcb   : > { %507 = dma.vmem_to_hbm [thread:$0]  (%p764_p9), %s392_s18, 64, %s389_s23, %s377_s28  }
  0xcc PF: > { %s403_s9 = sand.u32 1, %s666_s12   ;;  %p902_p12 = scmp.ne.s32.totalorder %s900_s27, 0 }
  0xcd   : > { %p903_p0 = scmp.ge.s32.totalorder %s686_s17, 2  ;;  %s404_s10 = scalar_lea.sflag [#allocation4], %s403_s9 }
  0xcf   : > { %p514_p1 = pnand %p903_p0, %p902_p12 }
  0xd1   : > { %p515_p2 = pneg %p514_p1 }
  0xd3   : > { %661 = dma.done.wait (%p515_p2), %s404_s10, 64  }
  0xd4   : > { %663 = vsyncadd (%p515_p2), %s404_s10, 4294967232  ;;  %s19_s17 = sadd.s32 1, %s686_s17   ;;  %s904_s12 = smov %s670_s13 }
  0xd5   : > { %p16_p3 = scmp.ge.s32.totalorder %s19_s17, 4   ;;  %s905_s13 = smov %s674_s14 }
  0xd6   : > { %s906_s14 = smov %s769_s26  ;;  %s907_s15 = smov %s682_s16 }
  0xd7   : > { %s908_s16 = smov %s910_s20  ;;  %18 = sbr.rel (!%p16_p3) target bundleno = 6 (0x6), region = 84 }
  0xdc   :  { %409 = vsyncpa [#allocation3], 1 }
  0xdd   :  { %411 = vsyncpa [#allocation3 + $0x1], 1 }
  0xde   :  { %412 = vsyncpa [#allocation4], 1 }
  0xdf   :  { %414 = vsyncpa [#allocation4 + $0x1], 1 }

</bundles_post_ra>
